<compile_context>
chip_gen: v7x
topology: tpu7x:2x2x1
jax: 0.10.0
libtpu: 0.0.40
codegen_flags: <defaults>
</compile_context>

<pallas_src>
import functools

import jax
import jax.numpy as jnp
from jax.experimental import pallas as pl
from jax.experimental.pallas import tpu as pltpu


def _filter_weight_kernel(orig_ref, gamma_ref, beta_ref, w1_ref, b1_ref,
                          w2_ref, b2_ref, wbase_ref, w_out_ref, acc_ref,
                          *, seq_len, eps, use_layer_norm):
    """grid = (B, n_seq_tiles); seq axis is the reduction axis (last, arbitrary).

    acc_ref (1, D) accumulates sum over seq of LayerNorm(original_input); on the
    last seq tile the MLP produces W = W_base + MLP(mean).
    """
    s = pl.program_id(1)
    n_s = pl.num_programs(1)

    @pl.when(s == 0)
    def _():
        acc_ref[...] = jnp.zeros_like(acc_ref)

    x = orig_ref[0].astype(jnp.float32)                       # (tS, D)
    if use_layer_norm:
        mu = jnp.mean(x, axis=-1, keepdims=True)
        var = jnp.mean((x - mu) ** 2, axis=-1, keepdims=True)
        x = (x - mu) * jax.lax.rsqrt(var + eps)
        x = x * gamma_ref[...] + beta_ref[...]                # (1,D) broadcast
    acc_ref[...] += jnp.sum(x, axis=0, keepdims=True)         # (1, D)

    @pl.when(s == n_s - 1)
    def _():
        ctx = acc_ref[...] * (1.0 / float(seq_len))           # (1, D)
        h = jnp.dot(ctx, w1_ref[...],
                    preferred_element_type=jnp.float32) + b1_ref[...]
        h = jnp.maximum(h, 0.0)                               # (1, H)
        d_w = jnp.dot(h, w2_ref[...],
                      preferred_element_type=jnp.float32) + b2_ref[...]
        w_out_ref[0] = wbase_ref[...] + d_w                   # (1, D)


def _apply_filter_kernel(w_ref, re_ref, im_ref, re_out_ref, im_out_ref):
    """grid = (B, n_seq_tiles), both parallel. Multiply re/im by the real filter."""
    w = w_ref[0]                                              # (1, D)
    re_out_ref[0] = re_ref[0] * w
    im_out_ref[0] = im_ref[0] * w


def _seq_tile(seq_len, dim, target_bytes=1 << 20):
    """Largest seq tile that divides seq_len, is a multiple of 8 (or the full
    seq), and keeps one (tS, D) f32 block around/under ~1 MiB."""
    cap = max(8, min(512, target_bytes // max(1, 4 * dim)))
    if seq_len <= cap:
        return seq_len
    start = cap - (cap % 8)
    for t in range(start, 7, -8):
        if seq_len % t == 0:
            return t
    return seq_len   # fall back to whole sequence in one tile


def adaptive_spectral_filter(fourier_representation, original_input,
                             gamma, beta, w1, b1, w2, b2, w_base,
                             *, layer_norm=True, eps=1e-5):
    """JAX/Pallas equivalent of AdaptiveSpectralFilter.forward.

    fourier_representation: complex64 (B, S, D)
    original_input:         float32   (B, S, D)
    gamma, beta:  LayerNorm weight/bias, shape (D,)
    w1 (D, H), b1 (H,), w2 (H, D), b2 (D,): the MLP (x @ w1 + b1 -> ReLU -> @ w2 + b2)
    w_base: (D,)  (the module's (1, 1, D) base filter)
    """
    x = original_input.astype(jnp.float32)
    B, S, D = x.shape
    H = w1.shape[1]
    tS = _seq_tile(S, D)
    n_s = S // tS

    g2 = gamma.reshape(1, D).astype(jnp.float32)
    be2 = beta.reshape(1, D).astype(jnp.float32)
    b1_2 = b1.reshape(1, H).astype(jnp.float32)
    b2_2 = b2.reshape(1, D).astype(jnp.float32)
    wb2 = w_base.reshape(1, D).astype(jnp.float32)
    w1f = w1.astype(jnp.float32)
    w2f = w2.astype(jnp.float32)

    const_d = pl.BlockSpec((1, D), lambda b, s: (0, 0))
    const_h = pl.BlockSpec((1, H), lambda b, s: (0, 0))

    weight_cost = pl.CostEstimate(
        flops=int(7 * B * S * D + 4 * B * D * H),
        transcendentals=int(B * S),
        bytes_accessed=int(4 * (B * S * D + 2 * D * H + 4 * D + H + B * D)),
    )

    # --- Kernel 1: per-batch filter weights W = W_base + MLP(mean(LN(x))) -----
    w_filt = pl.pallas_call(
        functools.partial(_filter_weight_kernel, seq_len=S, eps=float(eps),
                          use_layer_norm=bool(layer_norm)),
        out_shape=jax.ShapeDtypeStruct((B, 1, D), jnp.float32),
        grid_spec=pltpu.PrefetchScalarGridSpec(
            num_scalar_prefetch=0,
            grid=(B, n_s),
            in_specs=[
                pl.BlockSpec((1, tS, D), lambda b, s: (b, s, 0)),  # original_input
                const_d,                                           # LN gamma
                const_d,                                           # LN beta
                pl.BlockSpec((D, H), lambda b, s: (0, 0)),         # mlp w1
                const_h,                                           # mlp b1
                pl.BlockSpec((H, D), lambda b, s: (0, 0)),         # mlp w2
                const_d,                                           # mlp b2
                const_d,                                           # W_base
            ],
            out_specs=pl.BlockSpec((1, 1, D), lambda b, s: (b, 0, 0)),
            scratch_shapes=[pltpu.VMEM((1, D), jnp.float32)],
        ),
        compiler_params=pltpu.CompilerParams(
            dimension_semantics=("parallel", "arbitrary"),
        ),
        cost_estimate=weight_cost,
    )(x, g2, be2, w1f, b1_2, w2f, b2_2, wb2)

    # --- Kernel 2: elementwise filtering of the complex spectrum --------------
    re = jnp.real(fourier_representation).astype(jnp.float32)
    im = jnp.imag(fourier_representation).astype(jnp.float32)

    apply_cost = pl.CostEstimate(
        flops=int(2 * B * S * D),
        transcendentals=0,
        bytes_accessed=int(4 * (4 * B * S * D + B * D)),
    )

    seq_spec = pl.BlockSpec((1, tS, D), lambda b, s: (b, s, 0))
    re_f, im_f = pl.pallas_call(
        _apply_filter_kernel,
        out_shape=(
            jax.ShapeDtypeStruct((B, S, D), jnp.float32),
            jax.ShapeDtypeStruct((B, S, D), jnp.float32),
        ),
        grid_spec=pltpu.PrefetchScalarGridSpec(
            num_scalar_prefetch=0,
            grid=(B, n_s),
            in_specs=[
                pl.BlockSpec((1, 1, D), lambda b, s: (b, 0, 0)),   # W
                seq_spec,                                          # real part
                seq_spec,                                          # imag part
            ],
            out_specs=[seq_spec, seq_spec],
        ),
        compiler_params=pltpu.CompilerParams(
            dimension_semantics=("parallel", "parallel"),
        ),
        cost_estimate=apply_cost,
    )(w_filt, re, im)

    # TODO(synk): complex64 cannot live in VMEM refs; split/re-assembly stays in XLA.
    return jax.lax.complex(re_f, im_f)


def _reference(fourier_representation, original_input,
               gamma, beta, w1, b1, w2, b2, w_base,
               *, layer_norm=True, eps=1e-5):
    """Pure-JAX mirror of the PyTorch module's forward (for validation)."""
    x = original_input.astype(jnp.float32)
    if layer_norm:
        mu = jnp.mean(x, axis=-1, keepdims=True)
        var = jnp.mean((x - mu) ** 2, axis=-1, keepdims=True)
        x = (x - mu) / jnp.sqrt(var + eps) * gamma + beta
    ctx = jnp.mean(x, axis=1)                     # (B, D)
    h = jnp.maximum(ctx @ w1 + b1, 0.0)           # (B, H)
    d_w = h @ w2 + b2                             # (B, D)
    w = w_base + d_w                              # (B, D)
    return fourier_representation * w[:, None, :]


if __name__ == "__main__":
    key = jax.random.PRNGKey(0)
    B, S, D, H = 2, 8, 32, 128      # batch, seq_len, embedding_dim, mlp_hidden_dim
    ks = jax.random.split(key, 6)

    original_input = jax.random.normal(ks[0], (B, S, D), dtype=jnp.float32)
    signal = jax.random.normal(ks[1], (B, S, D), dtype=jnp.float32)
    fourier_representation = jnp.fft.fft(signal, axis=1).astype(jnp.complex64)

    # Module parameters (LayerNorm defaults, random MLP, W_base = ones).
    gamma = jnp.ones((D,), jnp.float32)
    beta = jnp.zeros((D,), jnp.float32)
    w1 = jax.random.normal(ks[2], (D, H), dtype=jnp.float32) * 0.1
    b1 = jax.random.normal(ks[3], (H,), dtype=jnp.float32) * 0.1
    w2 = jax.random.normal(ks[4], (H, D), dtype=jnp.float32) * 0.1
    b2 = jax.random.normal(ks[5], (D,), dtype=jnp.float32) * 0.1
    w_base = jnp.ones((D,), jnp.float32)

    out = adaptive_spectral_filter(fourier_representation, original_input,
                                   gamma, beta, w1, b1, w2, b2, w_base)
    out = jax.block_until_ready(out)

    ref = _reference(fourier_representation, original_input,
                     gamma, beta, w1, b1, w2, b2, w_base)

    assert out.shape == (B, S, D)
    assert out.dtype == jnp.complex64
    assert jnp.allclose(out, ref.astype(jnp.complex64), atol=1e-4, rtol=1e-4)

    print("KERNEL_OK")
</pallas_src>

<mosaic_0001>
module attributes {stable_mosaic.version = 11 : i64} {
  func.func @_filter_weight_kernel(%arg0: i32, %arg1: i32, %arg2: memref<1x8x32xf32, #tpu.memory_space<vmem>>, %arg3: memref<1x32xf32, #tpu.memory_space<vmem>>, %arg4: memref<1x32xf32, #tpu.memory_space<vmem>>, %arg5: memref<32x128xf32, #tpu.memory_space<vmem>>, %arg6: memref<1x128xf32, #tpu.memory_space<vmem>>, %arg7: memref<128x32xf32, #tpu.memory_space<vmem>>, %arg8: memref<1x32xf32, #tpu.memory_space<vmem>>, %arg9: memref<1x32xf32, #tpu.memory_space<vmem>>, %arg10: memref<1x1x32xf32, #tpu.memory_space<vmem>>, %arg11: memref<1x32xf32, #tpu.memory_space<vmem>>) attributes {dimension_semantics = [#tpu.dimension_semantics<parallel>, #tpu.dimension_semantics<arbitrary>], iteration_bounds = array<i64: 2, 1>, scalar_prefetch = 0 : i64, scratch_operands = 1 : i64, tpu.core_type = #tpu.core_type<tc>, window_params = [{transform_indices = @transform_0, window_bounds = array<i64: 1, 8, 32>}, {pipeline_mode = #tpu.pipeline_mode<synchronous>, transform_indices = @transform_1, window_bounds = array<i64: 1, 32>}, {pipeline_mode = #tpu.pipeline_mode<synchronous>, transform_indices = @transform_2, window_bounds = array<i64: 1, 32>}, {pipeline_mode = #tpu.pipeline_mode<synchronous>, transform_indices = @transform_3, window_bounds = array<i64: 32, 128>}, {pipeline_mode = #tpu.pipeline_mode<synchronous>, transform_indices = @transform_4, window_bounds = array<i64: 1, 128>}, {pipeline_mode = #tpu.pipeline_mode<synchronous>, transform_indices = @transform_5, window_bounds = array<i64: 128, 32>}, {pipeline_mode = #tpu.pipeline_mode<synchronous>, transform_indices = @transform_6, window_bounds = array<i64: 1, 32>}, {pipeline_mode = #tpu.pipeline_mode<synchronous>, transform_indices = @transform_7, window_bounds = array<i64: 1, 32>}, {transform_indices = @transform_8, window_bounds = array<i64: 1, 1, 32>}]} {
    %c0_i32 = arith.constant 0 : i32
    %0 = arith.cmpi eq, %arg1, %c0_i32 : i32
    %1 = arith.extui %0 : i1 to i32
    %c0_i32_0 = arith.constant 0 : i32
    %2 = arith.cmpi ne, %1, %c0_i32_0 : i32
    scf.if %2 {
      %cst_18 = arith.constant 0.000000e+00 : f32
      %37 = vector.broadcast %cst_18 : f32 to vector<1x32xf32>
      %c0_19 = arith.constant 0 : index
      %c0_20 = arith.constant 0 : index
      %38 = vector.load %arg11[%c0_19, %c0_20] : memref<1x32xf32, #tpu.memory_space<vmem>>, vector<1x32xf32>
      tpu.vector_store %arg11[%c0_19, %c0_20], %37 {strides = array<i32>} : memref<1x32xf32, #tpu.memory_space<vmem>>, vector<1x32xf32>,
    } else {
    }
    %c0 = arith.constant 0 : index
    %c0_1 = arith.constant 0 : index
    %c0_2 = arith.constant 0 : index
    %3 = vector.load %arg2[%c0, %c0_1, %c0_2] : memref<1x8x32xf32, #tpu.memory_space<vmem>>, vector<1x8x32xf32>
    %4 = vector.shape_cast %3 : vector<1x8x32xf32> to vector<8x32xf32>
    %cst = arith.constant dense<0.000000e+00> : vector<8xf32>
    %5 = vector.multi_reduction <add>, %4, %cst [1] : vector<8x32xf32> to vector<8xf32>
    %6 = vector.shape_cast %5 : vector<8xf32> to vector<8x1xf32>
    %cst_3 = arith.constant 3.200000e+01 : f32
    %7 = vector.broadcast %cst_3 : f32 to vector<8x1xf32>
    %8 = arith.divf %6, %7 : vector<8x1xf32>
    %9 = vector.broadcast %8 : vector<8x1xf32> to vector<8x32xf32>
    %10 = arith.subf %4, %9 : vector<8x32xf32>
    %11 = arith.mulf %10, %10 : vector<8x32xf32>
    %cst_4 = arith.constant dense<0.000000e+00> : vector<8xf32>
    %12 = vector.multi_reduction <add>, %11, %cst_4 [1] : vector<8x32xf32> to vector<8xf32>
    %13 = vector.shape_cast %12 : vector<8xf32> to vector<8x1xf32>
    %cst_5 = arith.constant 3.200000e+01 : f32
    %14 = vector.broadcast %cst_5 : f32 to vector<8x1xf32>
    %15 = arith.divf %13, %14 : vector<8x1xf32>
    %16 = vector.broadcast %8 : vector<8x1xf32> to vector<8x32xf32>
    %17 = arith.subf %4, %16 : vector<8x32xf32>
    %cst_6 = arith.constant 9.99999974E-6 : f32
    %18 = vector.broadcast %cst_6 : f32 to vector<8x1xf32>
    %19 = arith.addf %15, %18 : vector<8x1xf32>
    %20 = math.rsqrt %19 : vector<8x1xf32>
    %21 = vector.broadcast %20 : vector<8x1xf32> to vector<8x32xf32>
    %22 = arith.mulf %17, %21 : vector<8x32xf32>
    %c0_7 = arith.constant 0 : index
    %c0_8 = arith.constant 0 : index
    %23 = vector.load %arg3[%c0_7, %c0_8] : memref<1x32xf32, #tpu.memory_space<vmem>>, vector<1x32xf32>
    %24 = vector.broadcast %23 : vector<1x32xf32> to vector<8x32xf32>
    %25 = arith.mulf %22, %24 : vector<8x32xf32>
    %c0_9 = arith.constant 0 : index
    %c0_10 = arith.constant 0 : index
    %26 = vector.load %arg4[%c0_9, %c0_10] : memref<1x32xf32, #tpu.memory_space<vmem>>, vector<1x32xf32>
    %27 = vector.broadcast %26 : vector<1x32xf32> to vector<8x32xf32>
    %28 = arith.addf %25, %27 : vector<8x32xf32>
    %c0_11 = arith.constant 0 : index
    %c0_12 = arith.constant 0 : index
    %29 = vector.load %arg11[%c0_11, %c0_12] : memref<1x32xf32, #tpu.memory_space<vmem>>, vector<1x32xf32>
    %cst_13 = arith.constant dense<0.000000e+00> : vector<32xf32>
    %30 = vector.multi_reduction <add>, %28, %cst_13 [0] : vector<8x32xf32> to vector<32xf32>
    %31 = vector.shape_cast %30 : vector<32xf32> to vector<1x32xf32>
    %32 = arith.addf %29, %31 : vector<1x32xf32>
    %c0_14 = arith.constant 0 : index
    %c0_15 = arith.constant 0 : index
    %33 = vector.load %arg11[%c0_14, %c0_15] : memref<1x32xf32, #tpu.memory_space<vmem>>, vector<1x32xf32>
    tpu.vector_store %arg11[%c0_14, %c0_15], %32 {strides = array<i32>} : memref<1x32xf32, #tpu.memory_space<vmem>>, vector<1x32xf32>,
    %c0_i32_16 = arith.constant 0 : i32
    %34 = arith.cmpi eq, %arg1, %c0_i32_16 : i32
    %35 = arith.extui %34 : i1 to i32
    %c0_i32_17 = arith.constant 0 : i32
    %36 = arith.cmpi ne, %35, %c0_i32_17 : i32
    scf.if %36 {
      %c0_18 = arith.constant 0 : index
      %c0_19 = arith.constant 0 : index
      %37 = vector.load %arg11[%c0_18, %c0_19] : memref<1x32xf32, #tpu.memory_space<vmem>>, vector<1x32xf32>
      %cst_20 = arith.constant 1.250000e-01 : f32
      %38 = vector.broadcast %cst_20 : f32 to vector<1x32xf32>
      %39 = arith.mulf %37, %38 : vector<1x32xf32>
      %c0_21 = arith.constant 0 : index
      %c0_22 = arith.constant 0 : index
      %40 = vector.load %arg5[%c0_21, %c0_22] : memref<32x128xf32, #tpu.memory_space<vmem>>, vector<32x128xf32>
      %cst_23 = arith.constant dense<0.000000e+00> : vector<1x128xf32>
      %41 = tpu.matmul %39, %40, %cst_23 {dimension_numbers = #tpu.dot_dimension_numbers<[1], [0], [0], [1], [0, 0, 1, 1], [], []>} : vector<1x32xf32>, vector<32x128xf32>, vector<1x128xf32> -> vector<1x128xf32>
      %c0_24 = arith.constant 0 : index
      %c0_25 = arith.constant 0 : index
      %42 = vector.load %arg6[%c0_24, %c0_25] : memref<1x128xf32, #tpu.memory_space<vmem>>, vector<1x128xf32>
      %43 = arith.addf %41, %42 : vector<1x128xf32>
      %cst_26 = arith.constant 0.000000e+00 : f32
      %44 = vector.broadcast %cst_26 : f32 to vector<1x128xf32>
      %45 = arith.maximumf %43, %44 : vector<1x128xf32>
      %c0_27 = arith.constant 0 : index
      %c0_28 = arith.constant 0 : index
      %46 = vector.load %arg7[%c0_27, %c0_28] : memref<128x32xf32, #tpu.memory_space<vmem>>, vector<128x32xf32>
      %cst_29 = arith.constant dense<0.000000e+00> : vector<1x32xf32>
      %47 = tpu.matmul %45, %46, %cst_29 {dimension_numbers = #tpu.dot_dimension_numbers<[1], [0], [0], [1], [0, 0, 1, 1], [], []>} : vector<1x128xf32>, vector<128x32xf32>, vector<1x32xf32> -> vector<1x32xf32>
      %c0_30 = arith.constant 0 : index
      %c0_31 = arith.constant 0 : index
      %48 = vector.load %arg8[%c0_30, %c0_31] : memref<1x32xf32, #tpu.memory_space<vmem>>, vector<1x32xf32>
      %49 = arith.addf %47, %48 : vector<1x32xf32>
      %c0_32 = arith.constant 0 : index
      %c0_33 = arith.constant 0 : index
      %50 = vector.load %arg9[%c0_32, %c0_33] : memref<1x32xf32, #tpu.memory_space<vmem>>, vector<1x32xf32>
      %51 = arith.addf %50, %49 : vector<1x32xf32>
      %c0_34 = arith.constant 0 : index
      %c0_35 = arith.constant 0 : index
      %c0_36 = arith.constant 0 : index
      %52 = vector.load %arg10[%c0_34, %c0_35, %c0_36] : memref<1x1x32xf32, #tpu.memory_space<vmem>>, vector<1x1x32xf32>
      %53 = vector.shape_cast %52 : vector<1x1x32xf32> to vector<1x32xf32>
      %54 = vector.shape_cast %51 : vector<1x32xf32> to vector<1x1x32xf32>
      tpu.vector_store %arg10[%c0_34, %c0_35, %c0_36], %54 {strides = array<i32>} : memref<1x1x32xf32, #tpu.memory_space<vmem>>, vector<1x1x32xf32>,
    } else {
    }
    return
  }
  func.func @transform_0(%arg0: i32, %arg1: i32) -> (i32, i32, i32) {
    %c0_i32 = arith.constant 0 : i32
    %c0_i32_0 = arith.constant 0 : i32
    return %arg0, %arg1, %c0_i32 : i32, i32, i32
  }
  func.func @transform_1(%arg0: i32, %arg1: i32) -> (i32, i32) {
    %c0_i32 = arith.constant 0 : i32
    %c0_i32_0 = arith.constant 0 : i32
    %c0_i32_1 = arith.constant 0 : i32
    return %c0_i32, %c0_i32_0 : i32, i32
  }
  func.func @transform_2(%arg0: i32, %arg1: i32) -> (i32, i32) {
    %c0_i32 = arith.constant 0 : i32
    %c0_i32_0 = arith.constant 0 : i32
    %c0_i32_1 = arith.constant 0 : i32
    return %c0_i32, %c0_i32_0 : i32, i32
  }
  func.func @transform_3(%arg0: i32, %arg1: i32) -> (i32, i32) {
    %c0_i32 = arith.constant 0 : i32
    %c0_i32_0 = arith.constant 0 : i32
    %c0_i32_1 = arith.constant 0 : i32
    return %c0_i32, %c0_i32_0 : i32, i32
  }
  func.func @transform_4(%arg0: i32, %arg1: i32) -> (i32, i32) {
    %c0_i32 = arith.constant 0 : i32
    %c0_i32_0 = arith.constant 0 : i32
    %c0_i32_1 = arith.constant 0 : i32
    return %c0_i32, %c0_i32_0 : i32, i32
  }
  func.func @transform_5(%arg0: i32, %arg1: i32) -> (i32, i32) {
    %c0_i32 = arith.constant 0 : i32
    %c0_i32_0 = arith.constant 0 : i32
    %c0_i32_1 = arith.constant 0 : i32
    return %c0_i32, %c0_i32_0 : i32, i32
  }
  func.func @transform_6(%arg0: i32, %arg1: i32) -> (i32, i32) {
    %c0_i32 = arith.constant 0 : i32
    %c0_i32_0 = arith.constant 0 : i32
    %c0_i32_1 = arith.constant 0 : i32
    return %c0_i32, %c0_i32_0 : i32, i32
  }
  func.func @transform_7(%arg0: i32, %arg1: i32) -> (i32, i32) {
    %c0_i32 = arith.constant 0 : i32
    %c0_i32_0 = arith.constant 0 : i32
    %c0_i32_1 = arith.constant 0 : i32
    return %c0_i32, %c0_i32_0 : i32, i32
  }
  func.func @transform_8(%arg0: i32, %arg1: i32) -> (i32, i32, i32) {
    %c0_i32 = arith.constant 0 : i32
    %c0_i32_0 = arith.constant 0 : i32
    %c0_i32_1 = arith.constant 0 : i32
    return %arg0, %c0_i32, %c0_i32_0 : i32, i32, i32
  }
}

</mosaic_0001>

<bundles_post_ra>
// kernel: tpu_custom_call.1
= control target key start
LH: loop header
LB: loop body
LE: loop exit
PB: predicated region body
PF: predicated region fallthrough
CT: control target
= control target key end

     0   :  { %13 = vsyncpa [#allocation4], 0  ;;  %s1123_s0 = inlined_call_operand.vmem [shape: f32[2,8,32], index: 0, kind: input, shape index: {}]   ;;  %s1124_s1 = inlined_call_operand.vmem [shape: f32[1,32], index: 1, kind: input, shape index: {}]   ;;  %s1125_s2 = inlined_call_operand.vmem [shape: f32[1,32], index: 2, kind: input, shape index: {}]   ;;  %s1126_s3 = inlined_call_operand.vmem [shape: f32[32,128], index: 3, kind: input, shape index: {}]   ;;  %s1127_s4 = inlined_call_operand.vmem [shape: f32[1,128], index: 4, kind: input, shape index: {}]   ;;  %s1128_s5 = inlined_call_operand.vmem [shape: f32[128,32], index: 5, kind: input, shape index: {}]   ;;  %s1129_s6 = inlined_call_operand.vmem [shape: f32[1,32], index: 6, kind: input, shape index: {}]   ;;  %s1130_s7 = inlined_call_operand.vmem [shape: f32[1,32], index: 7, kind: input, shape index: {}]   ;;  %s1131_s8 = inlined_call_operand.hbm [shape: f32[2,1,32], index: 8, kind: output, shape index: {}]  }
   0x1   :  { %15 = vsyncpa [#allocation4 + $0x1], 0  ;;  %s924_s27 = smov 0   ;;  %s926_s28 = smov 0  }
   0x2   :  { %s928_s29 = smov 0   ;;  %s930_s30 = smov 0  }
   0x3   :  { %s932_s9 = smov 0   ;;  %s934_s10 = smov 0  }
   0x4 LB: > { %s625_s11 = sadd.s32 4294967295, %s873_s10   ;;  %s626_s12 = sadd.s32 4294967294, %s873_s10   ;;  %s873_s10 = sphi %s934_s10, %s21_s10   ;;  %s869_s9 = sphi %s932_s9, %s1138_s9   ;;  %s865_s30 = sphi %s930_s30, %s1137_s30   ;;  %s861_s29 = sphi %s928_s29, %s1136_s29   ;;  %s857_s28 = sphi %s926_s28, %s1135_s28   ;;  %s853_s27 = sphi %s924_s27, %s1134_s27  }
   0x5   : > { %s33_s13 = sadd.s32 1, %s869_s9  ;;  %s215_s14 = sadd.s32 1, %s861_s29 }
   0x6   : > { %p35_p0 = scmp.ge.s32.totalorder %s33_s13, 2  ;;  %p225_p1 = scmp.ne.s32.totalorder %s861_s29, %s857_s28 }
   0x7   : > { %p226_p2 = scmp.eq.s32.totalorder %s625_s11, 1  ;;  %p231_p3 = scmp.ne.s32.totalorder %s857_s28, %s853_s27 }
   0x8   : > { %s1140_s13 = smov (%p35_p0, %s33_s13), 0  ;;  %p232_p5 = scmp.eq.s32.totalorder %s626_s12, 1 }
   0x9   : > { %p964_p4 = por %p226_p2, %p225_p1  ;;  %s212_s16 = ssub.s32 %s869_s9, %s1140_s13 }
   0xa   : > { %p629_p6 = scmp.ge.s32.totalorder %s873_s10, 1  ;;  %p213_p7 = scmp.eq.s32.totalorder %s212_s16, 0 }
   0xb   : > { %p971_p8 = por %p232_p5, %p231_p3  ;;  %p281_p9 = scmp.lt.s32.totalorder %s873_s10, 3 }
   0xc   : > { %s977_s18 = scalar_select %p213_p7, %s861_s29, %s215_s14  }
   0xd   : > { %p282_p10 = pnand %p629_p6, %p281_p9 }
   0xe   : > { %p316_p11 = scmp.lt.s32.totalorder (!%p282_p10), %s865_s30, 1  ;;  %vm330_vm0 = vcmask (!%p282_p10), 261120   ;;  %v377_v7 = vld [vmem:[%s1126_s3] sm:$0xff] (!%p282_p10)  ;;  %v378_v8 = vld [vmem:[%s1126_s3 + $0x8] sm:$0xff] (!%p282_p10)  ;;  %v379_v9 = vld [vmem:[%s1126_s3 + $0x10] sm:$0xff] (!%p282_p10)  ;;  %vm327_vm1 = vcmask (!%p282_p10), 253952  }
   0xf   : > { %285 = sbr.rel (%p282_p10) target bundleno = 811 (0x32b), region = 52  ;;  %v875_v10 = vmov (!%p282_p10), 0.0|0.0   ;;  %v706_v11 = vpack.c.bf16 (!%p282_p10), %v378_v8, %v377_v7  ;;  %v380_v12 = vld [vmem:[%s1126_s3 + $0x18] sm:$0xff] (!%p282_p10)  ;;  %v876_v13 = vmov (!%p282_p10), 0.0   ;;  %vm877_vm2 = vmmov (!%p282_p10), 0   ;;  %v456_v15 = vld [vmem:[%s1128_s5] sm:$0xff] (!%p282_p10) }
  0x10   : > { %705 = vmatprep.subr.bf16.mxu0 (!%p282_p10), %v875_v10  ;;  %328 = vst.msk [vmem:[#allocation2] sm:$0x1] (!%p282_p10), %vm327_vm1, %v876_v13  ;;  %711 = vmatprep.subr.bf16.mxu1 (!%p282_p10), %v875_v10  ;;  %v709_v14 = vpack.c.bf16 (!%p282_p10), %v380_v12, %v379_v9  ;;  %v457_v16 = vld [vmem:[%s1128_s5 + $0x8] sm:$0xff] (!%p282_p10)  ;;  %v458_v17 = vld [vmem:[%s1128_s5 + $0x10] sm:$0xff] (!%p282_p10)  ;;  %v459_v19 = vld [vmem:[%s1128_s5 + $0x18] sm:$0xff] (!%p282_p10)  ;;  %s314_s22 = sand.u32 (!%p282_p10), 1, %s857_s28  }
  0x11   : > { %707 = vmatpush3.bf16.msra.mxu0 (!%p282_p10), %v706_v11  ;;  %667 = vmatprep.mubr.msk.f32.mxu0 (!%p282_p10), %vm877_vm2, %v876_v13  ;;  %v712_v18 = vpack.c.bf16 (!%p282_p10), %v457_v16, %v456_v15  ;;  %v715_v20 = vpack.c.bf16 (!%p282_p10), %v459_v19, %v458_v17  ;;  %v460_v21 = vld [vmem:[%s1128_s5 + $0x20] sm:$0xff] (!%p282_p10)  ;;  %v461_v22 = vld [vmem:[%s1128_s5 + $0x28] sm:$0xff] (!%p282_p10)  ;;  %v462_v24 = vld [vmem:[%s1128_s5 + $0x30] sm:$0xff] (!%p282_p10)  ;;  %s634_s11 = sshll.u32 (!%p282_p10), %s865_s30, 4  ;;  %s315_s12 = scalar_lea.vmem (!%p282_p10), [#allocation3], %s314_s22 }
  0x12   : > { %708 = vmatprep.subr.bf16.mxu0 (!%p282_p10), %v875_v10  ;;  %702 = vmatprep.mubr.msk.f32.mxu1 (!%p282_p10), %vm877_vm2, %v876_v13  ;;  %v718_v23 = vpack.c.bf16 (!%p282_p10), %v461_v22, %v460_v21  ;;  %v463_v25 = vld [vmem:[%s1128_s5 + $0x38] sm:$0xff] (!%p282_p10)  ;;  %v464_v27 = vld [vmem:[%s1128_s5 + $0x40] sm:$0xff] (!%p282_p10)  ;;  %v465_v28 = vld [vmem:[%s1128_s5 + $0x48] sm:$0xff] (!%p282_p10)  ;;  %s559_s14 = sshll.u32 (!%p282_p10), %s315_s12, 4  ;;  %s547_s21 = scalar_lea.sflag (!%p282_p10), [#allocation4], %s314_s22  ;;  %s1077_s14 = int_to_ptr.vmem [resolvable:$true] %s559_s14 }
  0x13   : > { %713 = vmatpush3.bf16.msra.mxu1 (!%p282_p10), %v712_v18  ;;  %v721_v26 = vpack.c.bf16 (!%p282_p10), %v463_v25, %v462_v24  ;;  %v724_v29 = vpack.c.bf16 (!%p282_p10), %v465_v28, %v464_v27  ;;  %v466_v30 = vld [vmem:[%s1128_s5 + $0x50] sm:$0xff] (!%p282_p10)  ;;  %v467_v31 = vld [vmem:[%s1128_s5 + $0x58] sm:$0xff] (!%p282_p10)  ;;  %v468_v33 = vld [vmem:[%s1128_s5 + $0x60] sm:$0xff] (!%p282_p10) }
  0x14   : > { %714 = vmatprep.subr.bf16.mxu1 (!%p282_p10), %v875_v10  ;;  %v727_v32 = vpack.c.bf16 (!%p282_p10), %v467_v31, %v466_v30  ;;  %v469_v34 = vld [vmem:[%s1128_s5 + $0x68] sm:$0xff] (!%p282_p10)  ;;  %v631_v40 = vld [vmem:[%s1124_s1] ss:$0 sm:$0xff] (!%p282_p10)  ;;  %v470_v56 = vld [vmem:[%s1128_s5 + $0x70] sm:$0xff] (!%p282_p10) }
  0x15   : > { %710 = vmatpush3.bf16.msra.mxu0 (!%p282_p10), %v709_v14  ;;  %v730_v35 = vpack.c.bf16 (!%p282_p10), %v469_v34, %v468_v33  ;;  %v632_v42 = vld [vmem:[%s1125_s2] ss:$0 sm:$0xff] (!%p282_p10)  ;;  %v471_v57 = vld [vmem:[%s1128_s5 + $0x78] sm:$0xff] (!%p282_p10) }
  0x16   : > { %s317_s19 = scalar_select %p316_p11, %s865_s30, 1  ;;  %v733_v58 = vpack.c.bf16 %v471_v57, %v470_v56  ;;  %v381_v59 = vld [vmem:[%s1127_s4] sm:$0x1] }
  0x17   : > { %716 = vmatpush3.bf16.msra.mxu1 %v715_v20  ;;  %v361_v51 = vld [vmem:[#allocation2] sm:$0x1]  ;;  %s878_s30 = smov [#allocation3]  }
  0x18   : > { %s630_s20 = sshll.u32 %s317_s19, 3  ;;  %717 = vmatprep.subr.bf16.mxu1 %v875_v10  ;;  %s799_s24 = sshll.u32 %s878_s30, 4  ;;  %s800_s24 = int_to_ptr.vmem [resolvable:$false] %s799_s24 }
  0x19   : > { %s322_s23 = scalar_lea.vmem %s1123_s0, %s630_s20  ;;  %s1075_s20 = scalar_lea.hbm %s1131_s8, %s634_s11 }
  0x1a   : > { %v329_v0 = vld [vmem:[%s322_s23] sm:$0xff]  ;;  %s795_s23 = scalar_lea.vmem %s1077_s14, 16  ;;  %s801_s25 = scalar_lea.vmem %s800_s24, 32 }
  0x1b   : > { %v331_v1 = vsel %vm330_vm0, %v329_v0, 0.0  ;;  %719 = vmatpush3.bf16.msra.mxu1 %v718_v23  ;;  %p796_p12 = scmp.ne.s32.totalorder %s1077_s14, %s795_s23  ;;  %p802_p1 = scmp.lt.s32.totalorder %s1077_s14, %s800_s24 }
  0x1c   : > { %332 = vadd.xlane.f32.xlu0 %v331_v1  ;;  %720 = vmatprep.subr.bf16.mxu1 %v875_v10  ;;  %p803_p2 = scmp.lt.s32.totalorder %s801_s25, %s795_s23 }
  0x1d   : > { %p797_p13 = pnand %p796_p12, %p964_p4 }
  0x1e   : > { %p804_p3 = por %p803_p2, %p802_p1 }
  0x1f   : > { %722 = vmatpush3.bf16.msra.mxu1 %v721_v26  ;;  %p798_p0 = pneg %p797_p13 }
  0x20   : > { %723 = vmatprep.subr.bf16.mxu1 %v875_v10 }
  0x21   : > { %p805_p5 = pnand %p804_p3, %p798_p0 }
  0x23   : > { %725 = vmatpush3.bf16.msra.mxu1 %v724_v29 }
  0x24   : > { %726 = vmatprep.subr.bf16.mxu1 %v875_v10 }
  0x27   : > { %728 = vmatpush3.bf16.msra.mxu1 %v727_v32 }
  0x28   : > { %729 = vmatprep.subr.bf16.mxu1 %v875_v10 }
  0x2b   : > { %731 = vmatpush3.bf16.msra.mxu1 %v730_v35 }
  0x2c   : > { %732 = vmatprep.subr.bf16.mxu1 %v875_v10 }
  0x2f   : > { %734 = vmatpush3.bf16.msra.mxu1 %v733_v58 }
  0xa9   : > { %v333_v2 = vpop.xlane.xlu0 %332 }
  0xaa   : > { %v335_v3 = vmul.f32 0.03125, %v333_v2  ;;  %v543_v2 = vld [vmem:[%s1130_s7] sm:$0x1] }
  0xac   : > { %v985_v4 = vsub.f32 %v329_v0, %v335_v3  ;;  %v472_v0 = vld [vmem:[%s1129_s6] sm:$0x1] }
  0xae   : > { %v337_v5 = vmul.f32 %v985_v4, %v985_v4 }
  0xb0   : > { %v338_v6 = vsel %vm330_vm0, %v337_v5, 0.0 }
  0xb1   : > { %339 = vadd.xlane.f32.xlu0 %v338_v6 }
 0x13e   : > { %v340_v36 = vpop.xlane.xlu0 %339 }
 0x13f   : > { %v341_v37 = vmul.f32 0.03125, %v340_v36 }
 0x141   : > { %v342_v38 = vadd.f32 1e-05, %v341_v37 }
 0x143   : > { %793 = vrsqrt.f32 %v342_v38 }
 0x14d   : > { %v794_v39 = vpop.eup %793 }
 0x14e   : > { %v344_v41 = vmul.f32 %v794_v39, %v985_v4 }
 0x150   : > { %v352_v43 = vmul.f32 %v631_v40, %v344_v41 }
 0x152   : > { %v360_v44 = vadd.f32 %v632_v42, %v352_v43 }
 0x154   : > { %v362_v45 = vsel %vm330_vm0, %v360_v44, 0.0 }
 0x155   : > { %v363_v46 = vrot.slane %v362_v45, 4 }
 0x157   : > { %v364_v47 = vadd.f32 %v363_v46, %v362_v45 }
 0x159   : > { %v365_v48 = vrot.slane %v364_v47, 2 }
 0x15b   : > { %v366_v49 = vadd.f32 %v365_v48, %v364_v47 }
 0x15d   : > { %v367_v50 = vrot.slane %v366_v49, 1 }
 0x15f   : > { %v368_v52 = vadd.f32 %v367_v50, %v366_v49 }
 0x161   : > { %v369_v53 = vadd.f32 %v368_v52, %v361_v51 }
 0x163   : > { %371 = vst.msk [vmem:[#allocation2] sm:$0x1] %vm327_vm1, %v369_v53 }
 0x16a   : > { %v375_v54 = vld [vmem:[#allocation2] sm:$0x1] }
 0x16b   : > { %v376_v55 = vmul.f32 0.125, %v375_v54 }
 0x16d   : > { %668 = vmatmul.mubr.msk.f32.vlgmr.msra.gmra.mrb[0].mxu0 %vm330_vm0, %v376_v55 }
 0x240   : > { %v451_v60 = vpop.f32.mrb[0].mxu0 }
 0x241   : > { %v452_v61 = vadd.f32 %v451_v60, %v381_v59  ;;  %v669_v62 = vpop.f32.mrb[1].mxu0 }
 0x243   : > { %v455_v63 = vmax.f32 %v452_v61, 0.0 }
 0x245   : > { %703 = vmatmul.mubr.f32.vlgmr.msra.gmra.mrb[0].mxu1 %v455_v63 }
 0x318   : > { %v539_v1 = vpop.f32.mrb[0].mxu1 }
 0x319   : > { %v540_v3 = vadd.f32 %v539_v1, %v472_v0  ;;  %v704_v4 = vpop.f32.mrb[1].mxu1 }
 0x31b   : > { %v544_v5 = vadd.f32 %v543_v2, %v540_v3 }
 0x31d   : > { %545 = vst.msk [vmem:[%s315_s12] sm:$0x1] %vm327_vm1, %v544_v5 }
 0x31e   : > { %808 = shalt.err (!%p805_p5)
}
 0x31f   : > { %s809_s22 = scalar_lea.hbm %s1075_s20, 16  ;;  %s813_s12 = scalar_lea.hbm %s1131_s8, 32 }
 0x320   : > { %p810_p6 = scmp.ne.s32.totalorder %s1075_s20, %s809_s22  ;;  %p814_p10 = scmp.lt.u32.totalorder %s1075_s20, %s1131_s8 }
 0x321   : > { %p815_p11 = scmp.lt.u32.totalorder %s813_s12, %s809_s22  ;;  %p817_p13 = scmp.lt.u32.totalorder %s809_s22, %s1075_s20 }
 0x322   : > { %p811_p7 = pnand %p810_p6, %p964_p4 }
 0x323   : > { %p816_p12 = por %p815_p11, %p814_p10 }
 0x324   : > { %p812_p9 = pneg %p811_p7 }
 0x325   : > { %p818_p0 = por %p817_p13, %p816_p12 }
 0x327   : > { %p819_p1 = pnand %p818_p0, %p812_p9 }
 0x329   : > { %822 = shalt.err (!%p819_p1)
}
 0x32a   : > { %735 = dma.vmem_to_hbm [thread:$0]  (%p964_p4), %s1077_s14, 16, %s1075_s20, %s547_s21  }
 0x32b PF: > { %p741_p2 = scmp.ge.s32.totalorder %s873_s10, 2  ;;  %s571_s23 = sand.u32 1, %s853_s27  }
 0x32c   : > { %s572_s30 = scalar_lea.sflag [#allocation4], %s571_s23 }
 0x32d   : > { %p738_p3 = pnand %p741_p2, %p971_p8 }
 0x32f   : > { %848 = dma.done.wait (!%p738_p3), %s572_s30, 16  }
 0x330   : > { %850 = vsyncadd (!%p738_p3), %s572_s30, 4294967280  ;;  %s21_s10 = sadd.s32 1, %s873_s10   ;;  %s1134_s27 = smov %s857_s28 }
 0x331   : > { %p18_p5 = scmp.ge.s32.totalorder %s21_s10, 4   ;;  %s1135_s28 = smov %s861_s29 }
 0x332   : > { %s1136_s29 = smov %s977_s18  ;;  %s1137_s30 = smov %s869_s9 }
 0x333   : > { %s1138_s9 = smov %s1140_s13  ;;  %20 = sbr.rel (!%p18_p5) target bundleno = 4 (0x4), region = 95 }
 0x33a   :  { %576 = vsyncpa [#allocation4], 1 }
 0x33b   :  { %578 = vsyncpa [#allocation4 + $0x1], 1 }

</bundles_post_ra>
